<compile_context>
chip_gen: v7x
topology: tpu7x:2x2x1
jax: 0.10.0
libtpu: 0.0.40
codegen_flags: <defaults>
</compile_context>

<pallas_src>
import jax
import jax.numpy as jnp
from jax.experimental import pallas as pl
from jax.experimental.pallas import tpu as pltpu


def attention_kernel(conv_ref,   # SMEM (2C+2,): [wqc(C), bqc, wkc(C), bkc]
                     x_ref,      # VMEM (C, B, HW) activations
                     w_ref,      # VMEM (HW, C*OF + OF) fused [ws-folded Wq | Wk^T]
                     b_ref,      # VMEM (1,  C*OF + OF) fused bias row
                     o_ref):     # VMEM (OF, B*C*OF) lane-dense output
    C, B, HW = x_ref.shape
    OF = o_ref.shape[0]
    COF = C * OF

    # ---- 1x1 convs (C -> 1): VPU weighted channel sums, scalars from SMEM ----
    qp = conv_ref[0] * x_ref[0]                  # (B, HW)
    kp = conv_ref[C + 1] * x_ref[0]              # (B, HW)
    for c in range(1, C):                        # static unroll, C is tiny
        qp = qp + conv_ref[c] * x_ref[c]
        kp = kp + conv_ref[C + 1 + c] * x_ref[c]
    qp = qp + conv_ref[C]                        # + bqc
    kp = kp + conv_ref[2 * C + 1]                # + bkc

    # ---- single fused MXU matmul: (2B, HW) @ (HW, C*OF + OF) ----
    lhs = jnp.concatenate([qp, kp], axis=0)      # (2B, HW)
    prod = jnp.dot(lhs, w_ref[...],
                   preferred_element_type=jnp.float32) + b_ref[...]
    # cross-blocks of `prod` carry the wrong bias; they are never read.
    q_ws = prod[:B, :COF]                        # (B, C*OF) = ws[c]*q[b,i] (+folded bias)
    k = prod[B:, COF:]                           # (B, OF)
    kT = jnp.transpose(k)                        # (OF, B): single tiny XLU transpose

    # ---- rank-1 outer products, assembled lane-dense ----
    # lanes carry the flat (b, c, i) index, sublanes carry the softmax axis j.
    slabs = [kT[:, b:b + 1] * q_ws[b:b + 1, :] for b in range(B)]  # (OF, C*OF) each
    s = jnp.concatenate(slabs, axis=1)           # (OF, B*C*OF)
    # NOTE: s_conv bias bs omitted on purpose (constant along the softmax axis).

    # ---- softmax over the sublane axis; single dense 2-vreg store ----
    m = jnp.max(s, axis=0, keepdims=True)        # (1, B*C*OF)
    e = jnp.exp(s - m)
    denom = jnp.sum(e, axis=0, keepdims=True)
    o_ref[...] = e * pl.reciprocal(denom)        # exact reciprocal (1e-5 tol)


def fuse_params(params):
    """One-time param prep: pack SMEM scalars, fold ws + C-fold into Wq, fuse weights."""
    wql_t = params["wql_t"]                      # (HW, OF)
    HW, OF = wql_t.shape
    ws = params["ws"]                            # (C,)
    C = ws.shape[0]
    # Wq_big[:, c*OF + i] = ws[c] * wql_t[:, i];  bq_big[c*OF + i] = ws[c] * bql[i]
    wq_big = (ws[None, :, None] * wql_t[:, None, :]).reshape(HW, C * OF)
    bq_big = (ws[:, None] * params["bql"][None, :]).reshape(C * OF)
    w_fused = jnp.concatenate([wq_big, params["wkl"].T], axis=1)          # (HW, C*OF+OF)
    b_fused = jnp.concatenate([bq_big, params["bkl"]])[None, :]           # (1,  C*OF+OF)
    conv_scal = jnp.concatenate([params["wqc"], params["bqc"],
                                 params["wkc"], params["bkc"]])           # (2C+2,)
    return conv_scal, w_fused, b_fused


@jax.jit
def attention_pallas(x, conv_scal, w_fused, b_fused):
    """x: (B, C, H, W) float32.  Returns (B, C, OF, OF) float32."""
    B, C, H, W = x.shape
    HW = H * W
    OF = w_fused.shape[1] // (C + 1)

    x_q = x.reshape(B, C, HW).transpose(1, 0, 2)        # (C, B, HW)

    smem = pl.BlockSpec(memory_space=pltpu.MemorySpace.SMEM)
    vmem = pl.BlockSpec(memory_space=pltpu.MemorySpace.VMEM)

    out = pl.pallas_call(
        attention_kernel,
        out_shape=jax.ShapeDtypeStruct((OF, B * C * OF), jnp.float32),
        in_specs=[smem, vmem, vmem, vmem],
        out_specs=vmem,
    )(conv_scal, x_q, w_fused, b_fused)

    # (OF_j, b*C*OF + c*OF + i) -> (B, C, OF_i, OF_j): pure layout plumbing in XLA.
    return out.reshape(OF, B, C, OF).transpose(1, 2, 3, 0)


def attention_ref(x, params):
    """Pure-JAX reference matching the PyTorch forward (includes s_conv bias)."""
    B, C, H, W = x.shape
    x_flat = x.reshape(B, C, H * W)
    qp = jnp.einsum("c,bcn->bn", params["wqc"], x_flat) + params["bqc"][0]
    kp = jnp.einsum("c,bcn->bn", params["wkc"], x_flat) + params["bkc"][0]
    q = qp @ params["wql_t"] + params["bql"]             # (B, OF)
    k = kp @ params["wkl"].T + params["bkl"]             # (B, OF)
    att = q[:, :, None] * k[:, None, :]                  # (B, OF, OF)
    s = (params["ws"][None, :, None, None] * att[:, None]
         + params["bs"][None, :, None, None])            # (B, C, OF, OF)
    return jax.nn.softmax(s, axis=-1)


def make_params(key, in_dim, in_feature, out_feature):
    ks = jax.random.split(key, 10)
    sc = 0.1
    return {
        # 1x1 convs (C -> 1): per-channel weight + scalar bias
        "wqc": sc * jax.random.normal(ks[0], (in_dim,), jnp.float32),
        "bqc": sc * jax.random.normal(ks[1], (1,), jnp.float32),
        "wkc": sc * jax.random.normal(ks[2], (in_dim,), jnp.float32),
        "bkc": sc * jax.random.normal(ks[3], (1,), jnp.float32),
        # query Linear pre-transposed (HW, OF); key Linear kept as (OF, HW)
        "wql_t": sc * jax.random.normal(ks[4], (in_feature, out_feature), jnp.float32),
        "bql": sc * jax.random.normal(ks[5], (out_feature,), jnp.float32),
        "wkl": sc * jax.random.normal(ks[6], (out_feature, in_feature), jnp.float32),
        "bkl": sc * jax.random.normal(ks[7], (out_feature,), jnp.float32),
        # s_conv 1x1 (1 -> C): per-channel scale + bias (bias only used in ref)
        "ws": sc * jax.random.normal(ks[8], (in_dim,), jnp.float32),
        "bs": sc * jax.random.normal(ks[9], (in_dim,), jnp.float32),
    }


if __name__ == "__main__":
    B, C, H, W = 2, 4, 16, 16        # in_dim=4, in_feature=H*W=256
    OF = 16                          # out_feature=16 -> B*C*OF = 128 lanes

    key = jax.random.PRNGKey(0)
    kx, kp = jax.random.split(key)
    x = jax.random.normal(kx, (B, C, H, W), jnp.float32)
    params = make_params(kp, C, H * W, OF)

    conv_scal, w_fused, b_fused = fuse_params(params)    # one-time param prep
    out = attention_pallas(x, conv_scal, w_fused, b_fused)
    out = jax.block_until_ready(out)

    ref = attention_ref(x, params)
    assert out.shape == (B, C, OF, OF)
    assert jnp.allclose(out, ref, atol=1e-5, rtol=1e-5), "mismatch vs reference"

    print("KERNEL_OK")
</pallas_src>

<mosaic_0001>
module attributes {stable_mosaic.version = 11 : i64} {
  func.func @attention_kernel(%arg0: memref<10xf32, #tpu.memory_space<smem>>, %arg1: memref<4x2x256xf32, #tpu.memory_space<vmem>>, %arg2: memref<256x80xf32, #tpu.memory_space<vmem>>, %arg3: memref<1x80xf32, #tpu.memory_space<vmem>>, %arg4: memref<16x128xf32, #tpu.memory_space<vmem>>) attributes {dimension_semantics = [], scalar_prefetch = 0 : i64, scratch_operands = 0 : i64, tpu.core_type = #tpu.core_type<tc>} {
    %c0 = arith.constant 0 : index
    %0 = memref.load %arg0[%c0] : memref<10xf32, #tpu.memory_space<smem>>
    %c0_0 = arith.constant 0 : index
    %c0_1 = arith.constant 0 : index
    %c0_2 = arith.constant 0 : index
    %1 = vector.load %arg1[%c0_0, %c0_1, %c0_2] : memref<4x2x256xf32, #tpu.memory_space<vmem>>, vector<1x2x256xf32>
    %2 = vector.shape_cast %1 : vector<1x2x256xf32> to vector<2x256xf32>
    %3 = vector.broadcast %0 : f32 to vector<2x256xf32>
    %4 = arith.mulf %3, %2 : vector<2x256xf32>
    %c5 = arith.constant 5 : index
    %5 = memref.load %arg0[%c5] : memref<10xf32, #tpu.memory_space<smem>>
    %c0_3 = arith.constant 0 : index
    %c0_4 = arith.constant 0 : index
    %c0_5 = arith.constant 0 : index
    %6 = vector.load %arg1[%c0_3, %c0_4, %c0_5] : memref<4x2x256xf32, #tpu.memory_space<vmem>>, vector<1x2x256xf32>
    %7 = vector.shape_cast %6 : vector<1x2x256xf32> to vector<2x256xf32>
    %8 = vector.broadcast %5 : f32 to vector<2x256xf32>
    %9 = arith.mulf %8, %7 : vector<2x256xf32>
    %c1 = arith.constant 1 : index
    %10 = memref.load %arg0[%c1] : memref<10xf32, #tpu.memory_space<smem>>
    %c1_6 = arith.constant 1 : index
    %c0_7 = arith.constant 0 : index
    %c0_8 = arith.constant 0 : index
    %11 = vector.load %arg1[%c1_6, %c0_7, %c0_8] : memref<4x2x256xf32, #tpu.memory_space<vmem>>, vector<1x2x256xf32>
    %12 = vector.shape_cast %11 : vector<1x2x256xf32> to vector<2x256xf32>
    %13 = vector.broadcast %10 : f32 to vector<2x256xf32>
    %14 = arith.mulf %13, %12 : vector<2x256xf32>
    %15 = arith.addf %4, %14 : vector<2x256xf32>
    %c6 = arith.constant 6 : index
    %16 = memref.load %arg0[%c6] : memref<10xf32, #tpu.memory_space<smem>>
    %c1_9 = arith.constant 1 : index
    %c0_10 = arith.constant 0 : index
    %c0_11 = arith.constant 0 : index
    %17 = vector.load %arg1[%c1_9, %c0_10, %c0_11] : memref<4x2x256xf32, #tpu.memory_space<vmem>>, vector<1x2x256xf32>
    %18 = vector.shape_cast %17 : vector<1x2x256xf32> to vector<2x256xf32>
    %19 = vector.broadcast %16 : f32 to vector<2x256xf32>
    %20 = arith.mulf %19, %18 : vector<2x256xf32>
    %21 = arith.addf %9, %20 : vector<2x256xf32>
    %c2 = arith.constant 2 : index
    %22 = memref.load %arg0[%c2] : memref<10xf32, #tpu.memory_space<smem>>
    %c2_12 = arith.constant 2 : index
    %c0_13 = arith.constant 0 : index
    %c0_14 = arith.constant 0 : index
    %23 = vector.load %arg1[%c2_12, %c0_13, %c0_14] : memref<4x2x256xf32, #tpu.memory_space<vmem>>, vector<1x2x256xf32>
    %24 = vector.shape_cast %23 : vector<1x2x256xf32> to vector<2x256xf32>
    %25 = vector.broadcast %22 : f32 to vector<2x256xf32>
    %26 = arith.mulf %25, %24 : vector<2x256xf32>
    %27 = arith.addf %15, %26 : vector<2x256xf32>
    %c7 = arith.constant 7 : index
    %28 = memref.load %arg0[%c7] : memref<10xf32, #tpu.memory_space<smem>>
    %c2_15 = arith.constant 2 : index
    %c0_16 = arith.constant 0 : index
    %c0_17 = arith.constant 0 : index
    %29 = vector.load %arg1[%c2_15, %c0_16, %c0_17] : memref<4x2x256xf32, #tpu.memory_space<vmem>>, vector<1x2x256xf32>
    %30 = vector.shape_cast %29 : vector<1x2x256xf32> to vector<2x256xf32>
    %31 = vector.broadcast %28 : f32 to vector<2x256xf32>
    %32 = arith.mulf %31, %30 : vector<2x256xf32>
    %33 = arith.addf %21, %32 : vector<2x256xf32>
    %c3 = arith.constant 3 : index
    %34 = memref.load %arg0[%c3] : memref<10xf32, #tpu.memory_space<smem>>
    %c3_18 = arith.constant 3 : index
    %c0_19 = arith.constant 0 : index
    %c0_20 = arith.constant 0 : index
    %35 = vector.load %arg1[%c3_18, %c0_19, %c0_20] : memref<4x2x256xf32, #tpu.memory_space<vmem>>, vector<1x2x256xf32>
    %36 = vector.shape_cast %35 : vector<1x2x256xf32> to vector<2x256xf32>
    %37 = vector.broadcast %34 : f32 to vector<2x256xf32>
    %38 = arith.mulf %37, %36 : vector<2x256xf32>
    %39 = arith.addf %27, %38 : vector<2x256xf32>
    %c8 = arith.constant 8 : index
    %40 = memref.load %arg0[%c8] : memref<10xf32, #tpu.memory_space<smem>>
    %c3_21 = arith.constant 3 : index
    %c0_22 = arith.constant 0 : index
    %c0_23 = arith.constant 0 : index
    %41 = vector.load %arg1[%c3_21, %c0_22, %c0_23] : memref<4x2x256xf32, #tpu.memory_space<vmem>>, vector<1x2x256xf32>
    %42 = vector.shape_cast %41 : vector<1x2x256xf32> to vector<2x256xf32>
    %43 = vector.broadcast %40 : f32 to vector<2x256xf32>
    %44 = arith.mulf %43, %42 : vector<2x256xf32>
    %45 = arith.addf %33, %44 : vector<2x256xf32>
    %c4 = arith.constant 4 : index
    %46 = memref.load %arg0[%c4] : memref<10xf32, #tpu.memory_space<smem>>
    %47 = vector.broadcast %46 : f32 to vector<2x256xf32>
    %48 = arith.addf %39, %47 : vector<2x256xf32>
    %c9 = arith.constant 9 : index
    %49 = memref.load %arg0[%c9] : memref<10xf32, #tpu.memory_space<smem>>
    %50 = vector.broadcast %49 : f32 to vector<2x256xf32>
    %51 = arith.addf %45, %50 : vector<2x256xf32>
    %52 = tpu.concatenate %48, %51 in 0 : vector<2x256xf32>, vector<2x256xf32> -> vector<4x256xf32>
    %c0_24 = arith.constant 0 : index
    %c0_25 = arith.constant 0 : index
    %53 = vector.load %arg2[%c0_24, %c0_25] : memref<256x80xf32, #tpu.memory_space<vmem>>, vector<256x80xf32>
    %cst = arith.constant dense<0.000000e+00> : vector<4x80xf32>
    %54 = tpu.matmul %52, %53, %cst {dimension_numbers = #tpu.dot_dimension_numbers<[1], [0], [0], [1], [0, 0, 1, 1], [], []>} : vector<4x256xf32>, vector<256x80xf32>, vector<4x80xf32> -> vector<4x80xf32>
    %c0_26 = arith.constant 0 : index
    %c0_27 = arith.constant 0 : index
    %55 = vector.load %arg3[%c0_26, %c0_27] : memref<1x80xf32, #tpu.memory_space<vmem>>, vector<1x80xf32>
    %56 = vector.broadcast %55 : vector<1x80xf32> to vector<4x80xf32>
    %57 = arith.addf %54, %56 : vector<4x80xf32>
    %58 = vector.extract_strided_slice %57 {offsets = [0, 0], sizes = [2, 64], strides = [1, 1]} : vector<4x80xf32> to vector<2x64xf32>
    %59 = vector.extract_strided_slice %57 {offsets = [2, 64], sizes = [2, 16], strides = [1, 1]} : vector<4x80xf32> to vector<2x16xf32>
    %60 = tpu.transpose %59, [1, 0] : vector<2x16xf32> -> vector<16x2xf32>
    %61 = vector.extract_strided_slice %60 {offsets = [0, 0], sizes = [16, 1], strides = [1, 1]} : vector<16x2xf32> to vector<16x1xf32>
    %62 = vector.extract_strided_slice %58 {offsets = [0, 0], sizes = [1, 64], strides = [1, 1]} : vector<2x64xf32> to vector<1x64xf32>
    %63 = vector.broadcast %61 : vector<16x1xf32> to vector<16x64xf32>
    %64 = vector.broadcast %62 : vector<1x64xf32> to vector<16x64xf32>
    %65 = arith.mulf %63, %64 : vector<16x64xf32>
    %66 = vector.extract_strided_slice %60 {offsets = [0, 1], sizes = [16, 1], strides = [1, 1]} : vector<16x2xf32> to vector<16x1xf32>
    %67 = vector.extract_strided_slice %58 {offsets = [1, 0], sizes = [1, 64], strides = [1, 1]} : vector<2x64xf32> to vector<1x64xf32>
    %68 = vector.broadcast %66 : vector<16x1xf32> to vector<16x64xf32>
    %69 = vector.broadcast %67 : vector<1x64xf32> to vector<16x64xf32>
    %70 = arith.mulf %68, %69 : vector<16x64xf32>
    %71 = tpu.concatenate %65, %70 in 1 : vector<16x64xf32>, vector<16x64xf32> -> vector<16x128xf32>
    %cst_28 = arith.constant dense<0xFF800000> : vector<128xf32>
    %72 = vector.multi_reduction <maximumf>, %71, %cst_28 [0] : vector<16x128xf32> to vector<128xf32>
    %73 = vector.shape_cast %72 : vector<128xf32> to vector<1x128xf32>
    %74 = vector.broadcast %73 : vector<1x128xf32> to vector<16x128xf32>
    %75 = arith.subf %71, %74 : vector<16x128xf32>
    %76 = math.exp %75 : vector<16x128xf32>
    %cst_29 = arith.constant dense<0.000000e+00> : vector<128xf32>
    %77 = vector.multi_reduction <add>, %76, %cst_29 [0] : vector<16x128xf32> to vector<128xf32>
    %78 = vector.shape_cast %77 : vector<128xf32> to vector<1x128xf32>
    %79 = tpu.reciprocal %78 : vector<1x128xf32> -> vector<1x128xf32>
    %80 = vector.broadcast %79 : vector<1x128xf32> to vector<16x128xf32>
    %81 = arith.mulf %76, %80 : vector<16x128xf32>
    %c0_30 = arith.constant 0 : index
    %c0_31 = arith.constant 0 : index
    %82 = vector.load %arg4[%c0_30, %c0_31] : memref<16x128xf32, #tpu.memory_space<vmem>>, vector<16x128xf32>
    tpu.vector_store %arg4[%c0_30, %c0_31], %81 {strides = array<i32>} : memref<16x128xf32, #tpu.memory_space<vmem>>, vector<16x128xf32>,
    return
  }
}

</mosaic_0001>

<bundles_post_ra>
// kernel: attention_pallas.1
= control target key start
LH: loop header
LB: loop body
LE: loop exit
PB: predicated region body
PF: predicated region fallthrough
CT: control target
= control target key end

     0   :  { %9 = vsyncpa [#allocation3], 0  ;;  %s610_s0 = inlined_call_operand.vmem [shape: f32[10], index: 0, kind: input, shape index: {}]   ;;  %s611_s1 = inlined_call_operand.vmem [shape: f32[4,2,256], index: 1, kind: input, shape index: {}]   ;;  %s612_s2 = inlined_call_operand.vmem [shape: f32[256,80], index: 2, kind: input, shape index: {}]   ;;  %s613_s3 = inlined_call_operand.vmem [shape: f32[1,80], index: 3, kind: input, shape index: {}]   ;;  %s614_s4 = inlined_call_operand.vmem [shape: f32[16,128], index: 4, kind: output, shape index: {}]  }
   0x1   :  { %s16_s17 = sshll.u32 %s610_s0, 4  ;;  %s17_s17 = int_to_ptr.vmem [resolvable:$true] %s16_s17 }
   0x2   :  { %s411_s18 = scalar_lea.vmem %s17_s17, 16  ;;  %p416_p1 = scmp.lt.s32.totalorder %s17_s17, %s17_s17 }
   0x3   :  { %p412_p0 = scmp.ne.s32.totalorder %s17_s17, %s411_s18  ;;  %p417_p2 = scmp.lt.s32.totalorder %s411_s18, %s411_s18 }
   0x5   :  { %p418_p3 = por %p417_p2, %p416_p1 }
   0x7   :  { %p419_p4 = pnand %p418_p3, %p412_p0 }
   0x9   :  { %422 = shalt.err (!%p419_p4)
}
   0xa   :  { %s425_s19 = smov [#allocation2]  }
   0xb   :  { %19 = dma.vmem_to_smem %s17_s17, 16, %s425_s19, [#allocation3]  }
   0xc   :  { %423 = dma.done.wait [#allocation3], 16  }
   0xd   :  { %424 = vsyncadd [#allocation3], 4294967280 }
   0xe   :  { %29 = sfence }
   0xf   :  { %v115_v0 = vld [vmem:[%s612_s2 + $0x80] sm:$0xff]  ;;  %v116_v1 = vld [vmem:[%s612_s2 + $0x88] sm:$0xff]  ;;  %s467_s25 = sld [smem:[#allocation2]]  ;;  %v117_v5 = vld [vmem:[%s612_s2 + $0x90] sm:$0xff]  ;;  %s478_s6 = sld [smem:[#allocation2 + $0x5]]  ;;  %v77_v17 = vlaneseq  ;;  %vm96_vm0 = vcmask 1041408  }
  0x10   :  { %v99_v2 = vld [vmem:[%s612_s2] sm:$0xff]  ;;  %v364_v3 = vpack.c.bf16 %v116_v1, %v115_v0  ;;  %v100_v4 = vld [vmem:[%s612_s2 + $0x8] sm:$0xff]  ;;  %v118_v6 = vld [vmem:[%s612_s2 + $0x98] sm:$0xff]  ;;  %s489_s13 = sld [smem:[#allocation2 + $0x1]]  ;;  %s494_s16 = sld [smem:[#allocation2 + $0x6]]  ;;  %vm283_vm1 = vcmask 523264  }
  0x11   :  { %v366_v7 = vpack.c.bf16 %v100_v4, %v99_v2  ;;  %v368_v8 = vpack.c.bf16 %v118_v6, %v117_v5  ;;  %v101_v9 = vld [vmem:[%s612_s2 + $0x10] sm:$0xff]  ;;  %v102_v10 = vld [vmem:[%s612_s2 + $0x18] sm:$0xff]  ;;  %v119_v11 = vld [vmem:[%s612_s2 + $0xa0] sm:$0xff]  ;;  %s496_s17 = sld [smem:[#allocation2 + $0x2]]  ;;  %s504_s22 = sld [smem:[#allocation2 + $0x7]]  ;;  %v530_v28 = vshrl.u32 %v77_v17, 7 }
  0x12   :  { %365 = vmatprep.subr.bf16.mxu0 %v364_v3  ;;  %v120_v12 = vld [vmem:[%s612_s2 + $0xa8] sm:$0xff]  ;;  %v370_v13 = vpack.c.bf16 %v102_v10, %v101_v9  ;;  %v103_v15 = vld [vmem:[%s612_s2 + $0x20] sm:$0xff]  ;;  %v121_v18 = vld [vmem:[%s612_s2 + $0xb0] sm:$0xff]  ;;  %s512_s27 = sld [smem:[#allocation2 + $0x3]]  ;;  %s514_s28 = sld [smem:[#allocation2 + $0x8]] }
  0x13   :  { %367 = vmatpush3.bf16.msra.mxu0 %v366_v7  ;;  %v372_v14 = vpack.c.bf16 %v120_v12, %v119_v11  ;;  %v104_v16 = vld [vmem:[%s612_s2 + $0x28] sm:$0xff]  ;;  %v122_v19 = vld [vmem:[%s612_s2 + $0xb8] sm:$0xff]  ;;  %v105_v21 = vld [vmem:[%s612_s2 + $0x30] sm:$0xff]  ;;  %s526_s8 = sld [smem:[#allocation2 + $0x4]]  ;;  %s528_s9 = sld [smem:[#allocation2 + $0x9]] }
  0x14   :  { %369 = vmatprep.subr.bf16.mxu0 %v368_v8  ;;  %v374_v20 = vpack.c.bf16 %v104_v16, %v103_v15  ;;  %v106_v22 = vld [vmem:[%s612_s2 + $0x38] sm:$0xff]  ;;  %v376_v25 = vpack.c.bf16 %v122_v19, %v121_v18  ;;  %v123_v29 = vld [vmem:[%s612_s2 + $0xc0] sm:$0xff]  ;;  %v124_v30 = vld [vmem:[%s612_s2 + $0xc8] sm:$0xff]  ;;  %v426_v49 = vmov 1983009808  }
  0x15   :  { %v32_v23 = vstv %s467_s25  ;;  %v35_v24 = vstv %s478_s6  ;;  %v31_v31 = vld [vmem:[%s611_s1] sm:$0xf]  ;;  %v378_v33 = vpack.c.bf16 %v106_v22, %v105_v21  ;;  %v318_v36 = vld [vmem:[%s611_s1 + $0x4] sm:$0xf]  ;;  %v380_v44 = vpack.c.bf16 %v124_v30, %v123_v29 }
  0x16   :  { %v40_v26 = vstv %s489_s13  ;;  %v44_v27 = vstv %s494_s16  ;;  %v33_v34 = vmul.f32 %v32_v23, %v31_v31  ;;  %v36_v35 = vmul.f32 %v35_v24, %v31_v31  ;;  %v321_v37 = vld [vmem:[%s611_s1 + $0x8] sm:$0xf]  ;;  %v324_v39 = vld [vmem:[%s611_s1 + $0xc] sm:$0xf] }
  0x17   :  { %371 = vmatpush3.bf16.msra.mxu0 %v370_v13  ;;  %v50_v32 = vstv %s496_s17  ;;  %v54_v38 = vstv %s504_s22  ;;  %v41_v40 = vmul.f32 %v318_v36, %v40_v26  ;;  %v45_v41 = vmul.f32 %v318_v36, %v44_v27  ;;  %v107_v45 = vld [vmem:[%s612_s2 + $0x40] sm:$0xff]  ;;  %v108_v46 = vld [vmem:[%s612_s2 + $0x48] sm:$0xff] }
  0x18   :  { %373 = vmatprep.subr.bf16.mxu0 %v372_v14  ;;  %v51_v42 = vmul.f32 %v321_v37, %v50_v32  ;;  %v55_v43 = vmul.f32 %v321_v37, %v54_v38  ;;  %v60_v47 = vstv %s512_s27  ;;  %v64_v48 = vstv %s514_s28  ;;  %v125_v51 = vld [vmem:[%s612_s2 + $0xd0] sm:$0xff]  ;;  %v126_v52 = vld [vmem:[%s612_s2 + $0xd8] sm:$0xff] }
  0x19   :  { %v75_v50 = vunpack.c.l.s4 %v426_v49  ;;  %v42_v53 = vadd.f32 %v41_v40, %v33_v34  ;;  %v46_v54 = vadd.f32 %v45_v41, %v36_v35  ;;  %v61_v55 = vmul.f32 %v324_v39, %v60_v47  ;;  %v109_v62 = vld [vmem:[%s612_s2 + $0x50] sm:$0xff]  ;;  %v110_v63 = vld [vmem:[%s612_s2 + $0x58] sm:$0xff]  ;;  %v127_v2 = vld [vmem:[%s612_s2 + $0xe0] sm:$0xff] }
  0x1a   :  { %v65_v56 = vmul.f32 %v324_v39, %v64_v48  ;;  %v382_v58 = vpack.c.bf16 %v108_v46, %v107_v45  ;;  %v384_v61 = vpack.c.bf16 %v126_v52, %v125_v51  ;;  %v68_v0 = vstv %s526_s8  ;;  %v128_v3 = vld [vmem:[%s612_s2 + $0xe8] sm:$0xff]  ;;  %v111_v11 = vld [vmem:[%s612_s2 + $0x60] sm:$0xff]  ;;  %v129_v13 = vld [vmem:[%s612_s2 + $0xf0] sm:$0xff] }
  0x1b   :  { %375 = vmatpush3.bf16.msra.mxu0 %v374_v20  ;;  %v76_v57 = vunpack.c.0.s8 %v75_v50  ;;  %v52_v59 = vadd.f32 %v51_v42, %v42_v53  ;;  %v56_v60 = vadd.f32 %v55_v43, %v46_v54  ;;  %v71_v1 = vstv %s528_s9  ;;  %v112_v12 = vld [vmem:[%s612_s2 + $0x68] sm:$0xff]  ;;  %v130_v14 = vld [vmem:[%s612_s2 + $0xf8] sm:$0xff]  ;;  %v113_v21 = vld [vmem:[%s612_s2 + $0x70] sm:$0xff] }
  0x1c   :  { %377 = vmatprep.subr.bf16.mxu0 %v376_v25  ;;  %v386_v7 = vpack.c.bf16 %v110_v63, %v109_v62  ;;  %v388_v10 = vpack.c.bf16 %v128_v3, %v127_v2  ;;  %v390_v17 = vpack.c.bf16 %v112_v12, %v111_v11  ;;  %v392_v20 = vpack.c.bf16 %v130_v14, %v129_v13  ;;  %v114_v22 = vld [vmem:[%s612_s2 + $0x78] sm:$0xff]  ;;  %v328_v30 = vld [vmem:[%s613_s3] ss:$0 sm:$0xff]  ;;  %s428_s2 = smov 64  }
  0x1d   :  { %v62_v4 = vadd.f32 %v61_v55, %v52_v59  ;;  %v66_v5 = vadd.f32 %v65_v56, %v56_v60  ;;  %v79_v6 = vsub.s32 %v76_v57, %v530_v28  ;;  %v394_v24 = vpack.c.bf16 %v114_v22, %v113_v21 }
  0x1e   :  { %v427_v27 = vmov 1   ;;  %v429_v38 = vmov 0   ;;  %v271_v39 = vsub.s32 1, %v530_v28  ;;  %v257_v47 = vsub.s32 0, %v530_v28 }
  0x1f   :  { %379 = vmatpush3.bf16.msra.mxu0 %v378_v33  ;;  %v69_v8 = vadd.f32 %v68_v0, %v62_v4  ;;  %v72_v9 = vadd.f32 %v71_v1, %v66_v5  ;;  %402 = vset.pattern.permute.xlu1 %v427_v27 }
  0x20   :  { %381 = vmatprep.subr.bf16.mxu0 %v380_v44 }
  0x21   :  { %v80_v15 = vrot.slane %v69_v8, %v79_v6  ;;  %v85_v16 = vcombine.low %v72_v9, %v72_v9 }
  0x23   :  { %383 = vmatpush3.bf16.msra.mxu0 %v382_v58  ;;  %v81_v18 = vcombine.high %v80_v15, %v80_v15  ;;  %v92_v19 = vrot.slane %v85_v16, %v79_v6 }
  0x24   :  { %385 = vmatprep.subr.bf16.mxu0 %v384_v61 }
  0x25   :  { %v93_v23 = vcombine.high %v92_v19, %v92_v19  ;;  %v97_v26 = vsel %vm96_vm0, %v80_v15, %v92_v19 }
  0x27   :  { %387 = vmatpush3.bf16.msra.mxu0 %v386_v7  ;;  %v98_v25 = vsel %vm96_vm0, %v81_v18, %v93_v23 }
  0x28   :  { %389 = vmatprep.subr.bf16.mxu0 %v388_v10  ;;  %202 = vmatprep.mubr.f32.mxu0 %v98_v25 }
  0x2b   :  { %391 = vmatpush3.bf16.msra.mxu0 %v390_v17 }
  0x2c   :  { %393 = vmatprep.subr.bf16.mxu0 %v392_v20 }
  0x2f   :  { %395 = vmatpush3.bf16.msra.mxu0 %v394_v24 }
  0x32   :  { %203 = vmatmul.mubr.f32.vlgmr.msra.gmra.mrb[0].mxu0 %v97_v26 }
 0x105   :  { %v361_v29 = vpop.f32.mrb[0].mxu0 }
 0x106   :  { %v362_v31 = vpop.f32.mrb[1].mxu0 }
 0x107   :  { %v363_v32 = vadd.f32 %v362_v31, %v361_v29 }
 0x109   :  { %v205_v33 = vadd.f32 %v363_v32, %v328_v30 }
 0x10b   :  { %v209_v34 = vrot.slane %v205_v33, 2  ;;  %v272_v40 = vrot.slane %v205_v33, %v271_v39  ;;  %v258_v49 = vrot.slane %v205_v33, %v257_v47 }
 0x10d   :  { %210 = vrot.lane.b32.xlu0 %v209_v34, %s428_s2 }
 0x17f   :  { %v211_v35 = vpop.permute.xlu0 %210 }
 0x180   :  { %213 = vxpose.xlu0.b32.start.end [1/1] (short) (narrow) %v211_v35, 16 }
 0x1a9   :  { %404 = vset.pattern.permute.xlu0 %v427_v27 }
 0x200   :  { %v229_v36 = vpop.trf.xlu0 }
 0x201   :  { %262 = vperm.xlu1 %402, %v229_v36  }
 0x204   :  { %v230_v37 = vpop.trf.xlu0 }
 0x205   :  { %266 = vperm.xlu1 %402, %v230_v37  }
 0x209   :  { %403 = vset.pattern.permute.xlu1 %v429_v38 }
 0x20a   :  { %247 = vperm.xlu1 %403, %v229_v36  }
 0x20e   :  { %252 = vperm.xlu1 %403, %v230_v37  }
 0x280   :  { %v263_v41 = vpop.permute.xlu1 %262 }
 0x281   :  { %v273_v42 = vmul.f32 %v272_v40, %v263_v41 }
 0x283   :  { %277 = vrot.lane.b32.xlu1 %v273_v42, %s428_s2 }
 0x284   :  { %v267_v43 = vpop.permute.xlu1 %266 }
 0x285   :  { %v274_v44 = vmul.f32 %v272_v40, %v267_v43 }
 0x287   :  { %279 = vrot.lane.b32.xlu1 %v274_v44, %s428_s2 }
 0x289   :  { %v248_v45 = vpop.permute.xlu1 %247 }
 0x28a   :  { %v259_v50 = vmul.f32 %v258_v49, %v248_v45 }
 0x28d   :  { %v253_v46 = vpop.permute.xlu1 %252 }
 0x28e   :  { %v260_v51 = vmul.f32 %v258_v49, %v253_v46 }
 0x2f5   :  { %v278_v48 = vpop.permute.xlu1 %277 }
 0x2f6   :  { %v284_v53 = vsel %vm283_vm1, %v259_v50, %v278_v48 }
 0x2f9   :  { %v280_v52 = vpop.permute.xlu1 %279 }
 0x2fa   :  { %v285_v54 = vsel %vm283_vm1, %v260_v51, %v280_v52 }
 0x2fb   :  { %v286_v55 = vmax.f32 %v284_v53, %v285_v54 }
 0x2fd   :  { %v287_v56 = vrot.slane %v286_v55, 4 }
 0x2ff   :  { %v288_v57 = vmax.f32 %v286_v55, %v287_v56 }
 0x301   :  { %v289_v58 = vrot.slane %v288_v57, 2 }
 0x303   :  { %v290_v59 = vmax.f32 %v288_v57, %v289_v58 }
 0x305   :  { %v291_v60 = vrot.slane %v290_v59, 1 }
 0x307   :  { %v292_v61 = vmax.f32 %v290_v59, %v291_v60 }
 0x309   :  { %v293_v62 = vsub.f32 %v284_v53, %v292_v61  ;;  %v294_v63 = vsub.f32 %v285_v54, %v292_v61 }
 0x30b   :  { %v295_v0 = vmul.f32 1.442695, %v293_v62  ;;  %v297_v1 = vmul.f32 1.442695, %v294_v63 }
 0x30d   :  { %405 = vpow2.f32 %v295_v0 }
 0x30e   :  { %407 = vpow2.f32 %v297_v1 }
 0x317   :  { %v406_v28 = vpop.eup %405 }
 0x318   :  { %v408_v2 = vpop.eup %407 }
 0x319   :  { %v299_v3 = vadd.f32 %v408_v2, %v406_v28 }
 0x31b   :  { %v300_v4 = vrot.slane %v299_v3, 4 }
 0x31d   :  { %v301_v5 = vadd.f32 %v300_v4, %v299_v3 }
 0x31f   :  { %v302_v6 = vrot.slane %v301_v5, 2 }
 0x321   :  { %v303_v7 = vadd.f32 %v302_v6, %v301_v5 }
 0x323   :  { %v304_v8 = vrot.slane %v303_v7, 1 }
 0x325   :  { %v305_v9 = vadd.f32 %v304_v8, %v303_v7 }
 0x327   :  { %409 = vrcp.f32 %v305_v9 }
 0x331   :  { %v410_v10 = vpop.eup %409 }
 0x332   :  { %v307_v11 = vmul.f32 %v410_v10, %v406_v28  ;;  %v308_v12 = vmul.f32 %v410_v10, %v408_v2 }
 0x334   :  { %309 = vst [vmem:[%s614_s4] sm:$0xff] %v307_v11  ;;  %310 = vst [vmem:[%s614_s4 + $0x8] sm:$0xff] %v308_v12 }
 0x335   :  { %315 = vsyncpa [#allocation3], 1 }

</bundles_post_ra>
